<compile_context>
chip_gen: v7x
topology: tpu7x:2x2x1
jax: 0.10.0
libtpu: 0.0.40
codegen_flags: <defaults>
</compile_context>

<pallas_src>
import functools

import jax
import jax.numpy as jnp
import numpy as np
from jax.experimental import pallas as pl
from jax.experimental.pallas import tpu as pltpu

LANE = 128
SUBLANE = 8
TILE = LANE * SUBLANE  # 1024 batch elements per full f32 vreg


def _cdiv(a, b):
    return -(-a // b)


def _round_up(a, b):
    return _cdiv(a, b) * b


def mlp_kernel(params_ref, x_ref, o_ref):
    # params_ref (SMEM f32[9]): [W1_00, W1_01, W1_10, W1_11, b1_0, b1_1, W2_00, W2_01, b2_0]
    # x_ref (VMEM): [2, tb//128, 128]   o_ref (VMEM): [tb//128, 128]
    x0 = x_ref[0].astype(jnp.float32)  # full (tb//128, 128) tile
    x1 = x_ref[1].astype(jnp.float32)

    w00 = params_ref[0]
    w01 = params_ref[1]
    w10 = params_ref[2]
    w11 = params_ref[3]
    b10 = params_ref[4]
    b11 = params_ref[5]
    v0 = params_ref[6]
    v1 = params_ref[7]
    b2 = params_ref[8]

    # torch.nn.Linear semantics: h = x @ W1^T + b1 ; y = relu(h) @ W2^T + b2
    h0 = jnp.maximum(x0 * w00 + x1 * w01 + b10, 0.0)
    h1 = jnp.maximum(x0 * w10 + x1 * w11 + b11, 0.0)
    y = h0 * v0 + h1 * v1 + b2
    o_ref[...] = y.astype(o_ref.dtype)


@functools.partial(jax.jit, static_argnames=("block_b",))
def mlp_forward(x, w1, b1, w2, b2, *, block_b=512 * 1024):
    """x: [B, 2]; w1: [2, 2] (torch [out,in]); b1: [2]; w2: [1, 2]; b2: [1]."""
    B, F = x.shape
    assert F == 2
    out_dtype = x.dtype
    in_dtype = x.dtype  # stream input in its native dtype (bf16 stays bf16)

    # Batch tiling: blocks are multiples of 1024 (full (8,128) tiles).  Cap the
    # block so that large batches keep >= ~8 grid steps (v7x dual-TC sharding),
    # never exceed block_b, and never exceed the padded batch itself.
    b_tile = _round_up(max(B, 1), TILE)
    tb_target = max(_round_up(_cdiv(b_tile, 8), TILE), TILE)
    tb = min(_round_up(block_b, TILE), b_tile, tb_target)
    grid_n = _cdiv(b_tile, tb)
    b_pad = grid_n * tb

    # VMEM budget: double-buffered input [2, tb] + output [tb] blocks + margin.
    in_bytes = np.dtype(in_dtype).itemsize
    out_bytes = np.dtype(out_dtype).itemsize
    working_set = 2 * (2 * tb * in_bytes + tb * out_bytes)
    vmem_limit = int(min(max(2 * working_set, 32 << 20), 48 << 20))

    # Prologue (fused under jit): pad tail, feature-major, batch over (sublane, lane).
    x_p = x if b_pad == B else jnp.pad(x, ((0, b_pad - B), (0, 0)))
    x_t = x_p.T.reshape(2, b_pad // LANE, LANE)

    # All 9 parameters flattened into one small SMEM array (scalar reads; no
    # padded VMEM tiles / per-step DMAs for tiny operands).
    params = jnp.concatenate(
        [w1.reshape(-1), b1.reshape(-1), w2.reshape(-1), b2.reshape(-1)]
    ).astype(jnp.float32)  # f32[9]

    out = pl.pallas_call(
        mlp_kernel,
        out_shape=jax.ShapeDtypeStruct((b_pad // LANE, LANE), out_dtype),
        grid_spec=pl.GridSpec(
            grid=(grid_n,),
            in_specs=[
                pl.BlockSpec(memory_space=pltpu.MemorySpace.SMEM),
                # TODO(synk): add pipeline_mode=pl.Buffered(3) only if a profile
                # at this block size still shows exposed input DMA.
                pl.BlockSpec((2, tb // LANE, LANE), lambda i: (0, i, 0)),
            ],
            out_specs=pl.BlockSpec((tb // LANE, LANE), lambda i: (i, 0)),
        ),
        compiler_params=pltpu.CompilerParams(
            dimension_semantics=("parallel",),  # shards steps across v7x's 2 TCs
            vmem_limit_bytes=vmem_limit,
        ),
    )(params, x_t)

    # Epilogue (fused under jit): back to [B, 1] in the caller's dtype.
    return out.reshape(b_pad, 1)[:B]


def init_params(key):
    """Deterministic init matching torch.nn.Linear shapes (uniform +/- 1/sqrt(fan_in))."""
    k1, k2, k3, k4 = jax.random.split(key, 4)
    bound = 1.0 / jnp.sqrt(2.0)
    w1 = jax.random.uniform(k1, (2, 2), jnp.float32, -bound, bound)  # [out=2, in=2]
    b1 = jax.random.uniform(k2, (2,), jnp.float32, -bound, bound)
    w2 = jax.random.uniform(k3, (1, 2), jnp.float32, -bound, bound)  # [out=1, in=2]
    b2 = jax.random.uniform(k4, (1,), jnp.float32, -bound, bound)
    return w1, b1, w2, b2


if __name__ == "__main__":
    key = jax.random.PRNGKey(0)
    kx, kp = jax.random.split(key)

    # Small shape consistent with the module (Linear(2,2)->ReLU->Linear(2,1)).
    B = 8
    x = jax.random.normal(kx, (B, 2), jnp.float32)
    w1, b1, w2, b2 = init_params(kp)

    y = mlp_forward(x, w1, b1, w2, b2)
    jax.block_until_ready(y)

    y_ref = jnp.maximum(x @ w1.T + b1, 0.0) @ w2.T + b2
    assert y.shape == (B, 1)
    assert jnp.allclose(y, y_ref, atol=1e-5, rtol=1e-5)

    # Multi-step grid + tail padding (grid_n = 5 at block_b=1024).
    B2 = 5000
    x2 = jax.random.normal(jax.random.PRNGKey(1), (B2, 2), jnp.float32)
    y2 = mlp_forward(x2, w1, b1, w2, b2, block_b=1024)
    jax.block_until_ready(y2)
    y2_ref = jnp.maximum(x2 @ w1.T + b1, 0.0) @ w2.T + b2
    assert y2.shape == (B2, 1)
    assert jnp.allclose(y2, y2_ref, atol=1e-5, rtol=1e-5)

    # bf16 streaming path: bf16 in / bf16 out, f32 compute in-register.
    x3 = x2.astype(jnp.bfloat16)
    y3 = mlp_forward(x3, w1, b1, w2, b2, block_b=1024)
    jax.block_until_ready(y3)
    y3_ref = jnp.maximum(x3.astype(jnp.float32) @ w1.T + b1, 0.0) @ w2.T + b2
    assert y3.shape == (B2, 1)
    assert y3.dtype == jnp.bfloat16
    assert jnp.allclose(y3.astype(jnp.float32), y3_ref, atol=3e-2, rtol=3e-2)

    print("KERNEL_OK")
</pallas_src>

<mosaic_0001>
module attributes {stable_mosaic.version = 11 : i64} {
  func.func @mlp_kernel(%arg0: i32, %arg1: memref<9xf32, #tpu.memory_space<smem>>, %arg2: memref<2x8x128xf32, #tpu.memory_space<vmem>>, %arg3: memref<8x128xf32, #tpu.memory_space<vmem>>) attributes {dimension_semantics = [#tpu.dimension_semantics<parallel>], iteration_bounds = array<i64: 1>, scalar_prefetch = 0 : i64, scratch_operands = 0 : i64, tpu.core_type = #tpu.core_type<tc>, window_params = [{transform_indices = @transform_0, window_bounds = array<i64: 9>}, {transform_indices = @transform_1, window_bounds = array<i64: 2, 8, 128>}, {transform_indices = @transform_2, window_bounds = array<i64: 8, 128>}]} {
    %c0 = arith.constant 0 : index
    %c0_0 = arith.constant 0 : index
    %c0_1 = arith.constant 0 : index
    %0 = vector.load %arg2[%c0, %c0_0, %c0_1] : memref<2x8x128xf32, #tpu.memory_space<vmem>>, vector<1x8x128xf32>
    %1 = vector.shape_cast %0 : vector<1x8x128xf32> to vector<8x128xf32>
    %c1 = arith.constant 1 : index
    %c0_2 = arith.constant 0 : index
    %c0_3 = arith.constant 0 : index
    %2 = vector.load %arg2[%c1, %c0_2, %c0_3] : memref<2x8x128xf32, #tpu.memory_space<vmem>>, vector<1x8x128xf32>
    %3 = vector.shape_cast %2 : vector<1x8x128xf32> to vector<8x128xf32>
    %c0_4 = arith.constant 0 : index
    %4 = memref.load %arg1[%c0_4] : memref<9xf32, #tpu.memory_space<smem>>
    %c1_5 = arith.constant 1 : index
    %5 = memref.load %arg1[%c1_5] : memref<9xf32, #tpu.memory_space<smem>>
    %c2 = arith.constant 2 : index
    %6 = memref.load %arg1[%c2] : memref<9xf32, #tpu.memory_space<smem>>
    %c3 = arith.constant 3 : index
    %7 = memref.load %arg1[%c3] : memref<9xf32, #tpu.memory_space<smem>>
    %c4 = arith.constant 4 : index
    %8 = memref.load %arg1[%c4] : memref<9xf32, #tpu.memory_space<smem>>
    %c5 = arith.constant 5 : index
    %9 = memref.load %arg1[%c5] : memref<9xf32, #tpu.memory_space<smem>>
    %c6 = arith.constant 6 : index
    %10 = memref.load %arg1[%c6] : memref<9xf32, #tpu.memory_space<smem>>
    %c7 = arith.constant 7 : index
    %11 = memref.load %arg1[%c7] : memref<9xf32, #tpu.memory_space<smem>>
    %c8 = arith.constant 8 : index
    %12 = memref.load %arg1[%c8] : memref<9xf32, #tpu.memory_space<smem>>
    %13 = vector.broadcast %4 : f32 to vector<8x128xf32>
    %14 = arith.mulf %1, %13 : vector<8x128xf32>
    %15 = vector.broadcast %5 : f32 to vector<8x128xf32>
    %16 = arith.mulf %3, %15 : vector<8x128xf32>
    %17 = arith.addf %14, %16 : vector<8x128xf32>
    %18 = vector.broadcast %8 : f32 to vector<8x128xf32>
    %19 = arith.addf %17, %18 : vector<8x128xf32>
    %cst = arith.constant 0.000000e+00 : f32
    %20 = vector.broadcast %cst : f32 to vector<8x128xf32>
    %21 = arith.maximumf %19, %20 : vector<8x128xf32>
    %22 = vector.broadcast %6 : f32 to vector<8x128xf32>
    %23 = arith.mulf %1, %22 : vector<8x128xf32>
    %24 = vector.broadcast %7 : f32 to vector<8x128xf32>
    %25 = arith.mulf %3, %24 : vector<8x128xf32>
    %26 = arith.addf %23, %25 : vector<8x128xf32>
    %27 = vector.broadcast %9 : f32 to vector<8x128xf32>
    %28 = arith.addf %26, %27 : vector<8x128xf32>
    %cst_6 = arith.constant 0.000000e+00 : f32
    %29 = vector.broadcast %cst_6 : f32 to vector<8x128xf32>
    %30 = arith.maximumf %28, %29 : vector<8x128xf32>
    %31 = vector.broadcast %10 : f32 to vector<8x128xf32>
    %32 = arith.mulf %21, %31 : vector<8x128xf32>
    %33 = vector.broadcast %11 : f32 to vector<8x128xf32>
    %34 = arith.mulf %30, %33 : vector<8x128xf32>
    %35 = arith.addf %32, %34 : vector<8x128xf32>
    %36 = vector.broadcast %12 : f32 to vector<8x128xf32>
    %37 = arith.addf %35, %36 : vector<8x128xf32>
    %c0_7 = arith.constant 0 : index
    %c0_8 = arith.constant 0 : index
    %38 = vector.load %arg3[%c0_7, %c0_8] : memref<8x128xf32, #tpu.memory_space<vmem>>, vector<8x128xf32>
    tpu.vector_store %arg3[%c0_7, %c0_8], %37 {strides = array<i32>} : memref<8x128xf32, #tpu.memory_space<vmem>>, vector<8x128xf32>,
    return
  }
  func.func @transform_0(%arg0: i32) -> i32 {
    %c0_i32 = arith.constant 0 : i32
    %c0_i32_0 = arith.constant 0 : i32
    return %c0_i32 : i32
  }
  func.func @transform_1(%arg0: i32) -> (i32, i32, i32) {
    %c0_i32 = arith.constant 0 : i32
    %c0_i32_0 = arith.constant 0 : i32
    %c0_i32_1 = arith.constant 0 : i32
    return %c0_i32, %arg0, %c0_i32_0 : i32, i32, i32
  }
  func.func @transform_2(%arg0: i32) -> (i32, i32) {
    %c0_i32 = arith.constant 0 : i32
    %c0_i32_0 = arith.constant 0 : i32
    return %arg0, %c0_i32 : i32, i32
  }
}

</mosaic_0001>

<bundles_post_ra>
// kernel: mlp_forward.1
= control target key start
LH: loop header
LB: loop body
LE: loop exit
PB: predicated region body
PF: predicated region fallthrough
CT: control target
= control target key end

     0   :  { %7 = vsyncpa [#allocation3], 0  ;;  %s117_s0 = inlined_call_operand.vmem [shape: f32[9], index: 0, kind: input, shape index: {}]   ;;  %s118_s1 = inlined_call_operand.vmem [shape: f32[2,8,128], index: 1, kind: input, shape index: {}]   ;;  %s119_s2 = inlined_call_operand.vmem [shape: f32[8,128], index: 2, kind: output, shape index: {}]  }
   0x1   :  { %s14_s11 = sshll.u32 %s117_s0, 4  ;;  %s15_s11 = int_to_ptr.vmem [resolvable:$true] %s14_s11 }
   0x2   :  { %s75_s12 = scalar_lea.vmem %s15_s11, 16  ;;  %p80_p1 = scmp.lt.s32.totalorder %s15_s11, %s15_s11 }
   0x3   :  { %p76_p0 = scmp.ne.s32.totalorder %s15_s11, %s75_s12  ;;  %p81_p2 = scmp.lt.s32.totalorder %s75_s12, %s75_s12 }
   0x5   :  { %p82_p3 = por %p81_p2, %p80_p1 }
   0x7   :  { %p83_p4 = pnand %p82_p3, %p76_p0 }
   0x9   :  { %86 = shalt.err (!%p83_p4)
}
   0xa   :  { %s89_s13 = smov [#allocation2]  }
   0xb   :  { %17 = dma.vmem_to_smem %s15_s11, 16, %s89_s13, [#allocation3]  }
   0xc   :  { %87 = dma.done.wait [#allocation3], 16  }
   0xd   :  { %88 = vsyncadd [#allocation3], 4294967280 }
   0xe   :  { %23 = sfence }
   0xf   :  { %s27_s14 = sld [smem:[#allocation2]]  ;;  %s66_s15 = sld [smem:[#allocation2 + $0x1]]  ;;  %v24_v0 = vld [vmem:[%s118_s1] sm:$0xff]  ;;  %v65_v1 = vld [vmem:[%s118_s1 + $0x8] sm:$0xff] }
  0x10   :  { %s67_s16 = sld [smem:[#allocation2 + $0x2]]  ;;  %s68_s17 = sld [smem:[#allocation2 + $0x3]] }
  0x11   :  { %s69_s18 = sld [smem:[#allocation2 + $0x4]]  ;;  %s70_s19 = sld [smem:[#allocation2 + $0x5]] }
  0x12   :  { %s71_s23 = sld [smem:[#allocation2 + $0x6]]  ;;  %s72_s24 = sld [smem:[#allocation2 + $0x7]] }
  0x13   :  { %s73_s25 = sld [smem:[#allocation2 + $0x8]] }
  0x15   :  { %v36_v2 = vstv %s27_s14  ;;  %v38_v3 = vstv %s66_s15 }
  0x16   :  { %v37_v4 = vmul.f32 %v36_v2, %v24_v0  ;;  %v39_v5 = vmul.f32 %v65_v1, %v38_v3  ;;  %v44_v6 = vstv %s67_s16  ;;  %v46_v7 = vstv %s68_s17 }
  0x17   :  { %v41_v8 = vstv %s69_s18  ;;  %v45_v9 = vmul.f32 %v44_v6, %v24_v0  ;;  %v47_v10 = vmul.f32 %v65_v1, %v46_v7  ;;  %v49_v12 = vstv %s70_s19 }
  0x18   :  { %v40_v11 = vadd.f32 %v39_v5, %v37_v4  ;;  %v52_v16 = vstv %s71_s23  ;;  %v54_v18 = vstv %s72_s24 }
  0x19   :  { %v48_v13 = vadd.f32 %v47_v10, %v45_v9  ;;  %v57_v22 = vstv %s73_s25 }
  0x1a   :  { %v42_v14 = vadd.f32 %v41_v8, %v40_v11 }
  0x1b   :  { %v50_v15 = vadd.f32 %v49_v12, %v48_v13 }
  0x1c   :  { %v43_v17 = vmax.f32 %v42_v14, 0.0 }
  0x1d   :  { %v51_v19 = vmax.f32 %v50_v15, 0.0 }
  0x1e   :  { %v53_v20 = vmul.f32 %v52_v16, %v43_v17 }
  0x1f   :  { %v55_v21 = vmul.f32 %v54_v18, %v51_v19 }
  0x21   :  { %v56_v23 = vadd.f32 %v55_v21, %v53_v20 }
  0x23   :  { %v58_v24 = vadd.f32 %v57_v22, %v56_v23 }
  0x25   :  { %59 = vst [vmem:[%s119_s2] sm:$0xff] %v58_v24 }
  0x26   :  { %64 = vsyncpa [#allocation3], 1 }

</bundles_post_ra>
